<compile_context>
chip_gen: v7x
topology: tpu7x:2x2x1
jax: 0.10.0
libtpu: 0.0.40
codegen_flags: <defaults>
</compile_context>

<pallas_src>
import functools

import jax
import jax.numpy as jnp
from jax.experimental import pallas as pl
from jax.experimental.pallas import tpu as pltpu

BN_EPS = 1e-5
STREAM_DTYPE = jnp.bfloat16      # dtype of the heavy HBM streams / MXU operands


def _silu_f32(x):
    # x * sigmoid(x); exp and the (approx) reciprocal go to the EUP slot.
    return x * pl.reciprocal(1.0 + jnp.exp(-x), approx=True)


def _silu_ref(x):
    return x * jax.nn.sigmoid(x)


def _round_up(x, m):
    return (x + m - 1) // m * m


def _tile_cols(m, target=1024, min_grid=8):
    """Lane-aligned column tile + padded column count.

    Prefers tiles that (a) divide the lane-padded M exactly so the wrapper
    pad / slice become no-ops, and (b) keep >= min_grid grid steps so the
    DMA/compute pipeline and v7x's two TensorCores stay busy."""
    mpad = _round_up(m, 128)
    divisors = [t for t in range(128, min(target, mpad) + 1, 128) if mpad % t == 0]
    deep = [t for t in divisors if mpad // t >= min_grid]
    tm = max(deep) if deep else max(divisors)
    return tm, mpad


# --------------------------------------------------------------------------
# Pallas kernels (all tensors are (C, M): channels in sublanes, spatial in lanes)
# --------------------------------------------------------------------------
def _stem_stage1_kernel(p1_ref, w1_ref, b1_ref, w2_ref, b2_ref, x1_ref, h_ref):
    # p1_ref : (9*c1, TM) bf16 im2col patches of the input (3x3 / s2 / p1)
    # w1_ref : (c_, 9*c1) bf16 cv1 weight, BN scale folded, transposed
    # w2_ref : (c_, c_)   bf16 cv2 weight, BN scale folded, transposed
    # x1_ref : (c_, TM)   cv1 output (pool-branch input), bf16, lane-dense
    # h_ref  : (c_, TM)   cv2(cv1(x)), bf16, lane-dense
    t = jnp.dot(w1_ref[...], p1_ref[...], preferred_element_type=jnp.float32)
    t = _silu_f32(t + b1_ref[...])
    t16 = t.astype(x1_ref.dtype)
    x1_ref[...] = t16

    h = jnp.dot(w2_ref[...], t16, preferred_element_type=jnp.float32)
    h = _silu_f32(h + b2_ref[...])
    h_ref[...] = h.astype(h_ref.dtype)


def _stem_stage2_kernel(p3_ref, xp_ref, w3_ref, b3_ref,
                        w4a_ref, w4b_ref, b4_ref, o_ref):
    # p3_ref : (9*c_, TM) bf16 im2col patches of h (3x3 / s2 / p1)
    # xp_ref : (c_, TM)   bf16 max-pooled cv1 output (second concat branch)
    # cv4's concat is folded into a weight split:
    #   out = silu(W4a @ cv3(h) + W4b @ pool(x1) + b4)
    y1 = jnp.dot(w3_ref[...], p3_ref[...], preferred_element_type=jnp.float32)
    y1 = _silu_f32(y1 + b3_ref[...])

    z = jnp.dot(w4a_ref[...], y1.astype(w4a_ref.dtype),
                preferred_element_type=jnp.float32)
    z = z + jnp.dot(w4b_ref[...], xp_ref[...],
                    preferred_element_type=jnp.float32)
    o_ref[...] = _silu_f32(z + b4_ref[...]).astype(o_ref.dtype)


# --------------------------------------------------------------------------
# pallas_call wrappers
# --------------------------------------------------------------------------
def _stage1_call(P1, w1t, b1, w2t, b2, c_, tm, mpad, out_dtype):
    K1 = P1.shape[0]
    return pl.pallas_call(
        _stem_stage1_kernel,
        out_shape=(jax.ShapeDtypeStruct((c_, mpad), out_dtype),
                   jax.ShapeDtypeStruct((c_, mpad), out_dtype)),
        grid=(mpad // tm,),
        in_specs=[
            pl.BlockSpec((K1, tm), lambda i: (0, i)),
            pl.BlockSpec((c_, K1), lambda i: (0, 0)),
            pl.BlockSpec((c_, 1), lambda i: (0, 0)),
            pl.BlockSpec((c_, c_), lambda i: (0, 0)),
            pl.BlockSpec((c_, 1), lambda i: (0, 0)),
        ],
        out_specs=(pl.BlockSpec((c_, tm), lambda i: (0, i)),
                   pl.BlockSpec((c_, tm), lambda i: (0, i))),
        compiler_params=pltpu.CompilerParams(dimension_semantics=("parallel",)),
    )(P1, w1t, b1, w2t, b2)


def _stage2_call(P3, XP, w3t, b3, w4at, w4bt, b4, c2, tm, mpad, out_dtype):
    K3 = P3.shape[0]
    c_ = XP.shape[0]
    return pl.pallas_call(
        _stem_stage2_kernel,
        out_shape=jax.ShapeDtypeStruct((c2, mpad), out_dtype),
        grid=(mpad // tm,),
        in_specs=[
            pl.BlockSpec((K3, tm), lambda i: (0, i)),
            pl.BlockSpec((c_, tm), lambda i: (0, i)),
            pl.BlockSpec((c_, K3), lambda i: (0, 0)),
            pl.BlockSpec((c_, 1), lambda i: (0, 0)),
            pl.BlockSpec((c2, c_), lambda i: (0, 0)),
            pl.BlockSpec((c2, c_), lambda i: (0, 0)),
            pl.BlockSpec((c2, 1), lambda i: (0, 0)),
        ],
        out_specs=pl.BlockSpec((c2, tm), lambda i: (0, i)),
        compiler_params=pltpu.CompilerParams(dimension_semantics=("parallel",)),
    )(P3, XP, w3t, b3, w4at, w4bt, b4)


# --------------------------------------------------------------------------
# im2col / padding helpers (wrapper-side, pure XLA)
# --------------------------------------------------------------------------
def _im2col_s2(xcf, Ho, Wo):
    """Channels-first (C,N,H,W) -> (9*C, N*Ho*Wo) patches of a 3x3/s2/p1 conv."""
    C, N, H, W = xcf.shape
    xp = jnp.pad(xcf, ((0, 0), (0, 0), (1, 1), (1, 1)))
    taps = []
    for ky in range(3):
        for kx in range(3):
            taps.append(jax.lax.slice(
                xp, (0, 0, ky, kx),
                (C, N, ky + 2 * Ho - 1, kx + 2 * Wo - 1),
                (1, 1, 2, 2)))
    # row ordering (ky, kx, c) matches w.reshape(9*C, Cout)
    pat = jnp.concatenate(taps, axis=0)
    return pat.reshape(9 * C, N * Ho * Wo)


def _pad_cols(a, mpad):
    m = a.shape[1]
    return a if m == mpad else jnp.pad(a, ((0, 0), (0, mpad - m)))


# --------------------------------------------------------------------------
# Parameter construction (deterministic, folded Conv+BN, inference semantics)
# --------------------------------------------------------------------------
def _conv_bn_params(key, cin, cout, k):
    k1, k2, k3, k4, k5 = jax.random.split(key, 5)
    w = jax.random.normal(k1, (k, k, cin, cout), jnp.float32) / jnp.sqrt(k * k * cin)
    gamma = 1.0 + 0.1 * jax.random.normal(k2, (cout,), jnp.float32)
    beta = 0.1 * jax.random.normal(k3, (cout,), jnp.float32)
    mean = 0.1 * jax.random.normal(k4, (cout,), jnp.float32)
    var = jnp.abs(jax.random.normal(k5, (cout,), jnp.float32)) + 0.5
    scale = gamma / jnp.sqrt(var + BN_EPS)
    bias = beta - mean * scale
    return {"w": w, "scale": scale, "bias": bias}


def make_stem_params(key, c1, c2):
    c_ = c2 // 2
    ks = jax.random.split(key, 4)
    return {
        "cv1": _conv_bn_params(ks[0], c1, c_, 3),       # 3x3 / s2
        "cv2": _conv_bn_params(ks[1], c_, c_, 1),       # 1x1
        "cv3": _conv_bn_params(ks[2], c_, c_, 3),       # 3x3 / s2
        "cv4": _conv_bn_params(ks[3], 2 * c_, c2, 1),   # 1x1 on concat
    }


# --------------------------------------------------------------------------
# Forward pass (2 fused Pallas kernels)
# --------------------------------------------------------------------------
def stem_forward(params, x_nchw):
    N, c1, H, W = x_nchw.shape
    c_ = params["cv1"]["w"].shape[3]
    c2 = params["cv4"]["w"].shape[3]
    out_dtype = x_nchw.dtype

    H2 = (H - 1) // 2 + 1
    W2 = (W - 1) // 2 + 1
    # Stem requires even post-cv1 spatial dims (true for YOLO input sizes).
    assert H2 % 2 == 0 and W2 % 2 == 0, (H2, W2)
    H4, W4 = H2 // 2, W2 // 2

    xcf = jnp.transpose(x_nchw, (1, 0, 2, 3))           # (c1, N, H, W)

    # ---- fold BN scale into (transposed) weights; bf16 operand streams ----
    s1 = params["cv1"]["scale"]; s2 = params["cv2"]["scale"]
    s3 = params["cv3"]["scale"]; s4 = params["cv4"]["scale"]
    w1t = (params["cv1"]["w"].reshape(9 * c1, c_).T * s1[:, None]).astype(STREAM_DTYPE)
    w2t = (params["cv2"]["w"][0, 0].T * s2[:, None]).astype(STREAM_DTYPE)
    w3t = (params["cv3"]["w"].reshape(9 * c_, c_).T * s3[:, None]).astype(STREAM_DTYPE)
    w4 = params["cv4"]["w"][0, 0]                       # (2*c_, c2)
    w4at = (w4[:c_].T * s4[:, None]).astype(STREAM_DTYPE)   # cv3 branch
    w4bt = (w4[c_:].T * s4[:, None]).astype(STREAM_DTYPE)   # pool branch
    b1 = params["cv1"]["bias"].reshape(c_, 1)
    b2 = params["cv2"]["bias"].reshape(c_, 1)
    b3 = params["cv3"]["bias"].reshape(c_, 1)
    b4 = params["cv4"]["bias"].reshape(c2, 1)

    # ---- stage 1: cv1 (3x3/s2) + cv2 (1x1), one pallas_call ----
    M1 = N * H2 * W2
    tm1, m1p = _tile_cols(M1)
    P1 = _pad_cols(_im2col_s2(xcf.astype(STREAM_DTYPE), H2, W2), m1p)

    x1f, hf = _stage1_call(P1, w1t, b1, w2t, b2, c_, tm1, m1p, STREAM_DTYPE)

    x1 = x1f[:, :M1].reshape(c_, N, H2, W2)
    h = hf[:, :M1].reshape(c_, N, H2, W2)

    # ---- max-pool branch (2x2 / s2), XLA strided slices + maximum ----
    p00 = x1[:, :, 0:2 * H4:2, 0:2 * W4:2]
    p01 = x1[:, :, 0:2 * H4:2, 1:2 * W4:2]
    p10 = x1[:, :, 1:2 * H4:2, 0:2 * W4:2]
    p11 = x1[:, :, 1:2 * H4:2, 1:2 * W4:2]
    pool = jnp.maximum(jnp.maximum(p00, p01), jnp.maximum(p10, p11))

    # ---- stage 2: cv3 (3x3/s2) + cv4 (1x1; concat folded by weight split) ----
    M2 = N * H4 * W4
    tm2, m2p = _tile_cols(M2)
    P3 = _pad_cols(_im2col_s2(h, H4, W4), m2p)
    XP = _pad_cols(pool.reshape(c_, M2), m2p)

    outf = _stage2_call(P3, XP, w3t, b3, w4at, w4bt, b4, c2, tm2, m2p, out_dtype)

    out = outf[:, :M2].reshape(c2, N, H4, W4)
    return jnp.transpose(out, (1, 0, 2, 3))             # NCHW


# --------------------------------------------------------------------------
# Pure-JAX reference (independent path: conv_general_dilated + reduce_window)
# --------------------------------------------------------------------------
def _ref_conv_bn_silu(x, p, stride):
    w = jnp.transpose(p["w"], (3, 2, 0, 1))             # OIHW
    k = p["w"].shape[0]
    pad = k // 2
    y = jax.lax.conv_general_dilated(
        x, w, window_strides=(stride, stride),
        padding=((pad, pad), (pad, pad)),
        dimension_numbers=("NCHW", "OIHW", "NCHW"),
        precision=jax.lax.Precision.HIGHEST)
    y = y * p["scale"][None, :, None, None] + p["bias"][None, :, None, None]
    return _silu_ref(y)


def stem_reference(params, x):
    x1 = _ref_conv_bn_silu(x, params["cv1"], 2)
    h = _ref_conv_bn_silu(x1, params["cv2"], 1)
    y1 = _ref_conv_bn_silu(h, params["cv3"], 2)
    pool = jax.lax.reduce_window(x1, -jnp.inf, jax.lax.max,
                                 (1, 1, 2, 2), (1, 1, 2, 2), "VALID")
    cat = jnp.concatenate([y1, pool], axis=1)
    return _ref_conv_bn_silu(cat, params["cv4"], 1)


# --------------------------------------------------------------------------
if __name__ == "__main__":
    key = jax.random.PRNGKey(0)
    k_param, k_x = jax.random.split(key)

    c1, c2 = 4, 8
    N, H, W = 2, 16, 16

    params = make_stem_params(k_param, c1, c2)
    x = jax.random.normal(k_x, (N, c1, H, W), jnp.float32)   # NCHW, like PyTorch

    fwd = jax.jit(functools.partial(stem_forward, params))
    out = fwd(x)
    jax.block_until_ready(out)

    assert out.shape == (N, c2, H // 4, W // 4), out.shape

    ref = stem_reference(params, x)
    jax.block_until_ready(ref)
    err = float(jnp.max(jnp.abs(out.astype(jnp.float32) - ref)))
    # bf16 data streams vs f32 HIGHEST-precision reference -> 5e-2 tolerance.
    assert err < 5e-2, err

    print("KERNEL_OK")
</pallas_src>

<mosaic_0001>
module attributes {stable_mosaic.version = 11 : i64} {
  func.func @_stem_stage1_kernel(%arg0: i32, %arg1: memref<36x128xbf16, #tpu.memory_space<vmem>>, %arg2: memref<4x36xbf16, #tpu.memory_space<vmem>>, %arg3: memref<4x1xf32, #tpu.memory_space<vmem>>, %arg4: memref<4x4xbf16, #tpu.memory_space<vmem>>, %arg5: memref<4x1xf32, #tpu.memory_space<vmem>>, %arg6: memref<4x128xbf16, #tpu.memory_space<vmem>>, %arg7: memref<4x128xbf16, #tpu.memory_space<vmem>>) attributes {dimension_semantics = [#tpu.dimension_semantics<parallel>], iteration_bounds = array<i64: 1>, scalar_prefetch = 0 : i64, scratch_operands = 0 : i64, tpu.core_type = #tpu.core_type<tc>, window_params = [{transform_indices = @transform_0, window_bounds = array<i64: 36, 128>}, {pipeline_mode = #tpu.pipeline_mode<synchronous>, transform_indices = @transform_1, window_bounds = array<i64: 4, 36>}, {pipeline_mode = #tpu.pipeline_mode<synchronous>, transform_indices = @transform_2, window_bounds = array<i64: 4, 1>}, {pipeline_mode = #tpu.pipeline_mode<synchronous>, transform_indices = @transform_3, window_bounds = array<i64: 4, 4>}, {pipeline_mode = #tpu.pipeline_mode<synchronous>, transform_indices = @transform_4, window_bounds = array<i64: 4, 1>}, {transform_indices = @transform_5, window_bounds = array<i64: 4, 128>}, {transform_indices = @transform_6, window_bounds = array<i64: 4, 128>}]} {
    %c0 = arith.constant 0 : index
    %c0_0 = arith.constant 0 : index
    %0 = vector.load %arg2[%c0, %c0_0] : memref<4x36xbf16, #tpu.memory_space<vmem>>, vector<4x36xbf16>
    %c0_1 = arith.constant 0 : index
    %c0_2 = arith.constant 0 : index
    %1 = vector.load %arg1[%c0_1, %c0_2] : memref<36x128xbf16, #tpu.memory_space<vmem>>, vector<36x128xbf16>
    %cst = arith.constant dense<0.000000e+00> : vector<4x128xf32>
    %2 = tpu.matmul %0, %1, %cst {dimension_numbers = #tpu.dot_dimension_numbers<[1], [0], [0], [1], [0, 0, 1, 1], [], []>} : vector<4x36xbf16>, vector<36x128xbf16>, vector<4x128xf32> -> vector<4x128xf32>
    %c0_3 = arith.constant 0 : index
    %c0_4 = arith.constant 0 : index
    %3 = vector.load %arg3[%c0_3, %c0_4] : memref<4x1xf32, #tpu.memory_space<vmem>>, vector<4x1xf32>
    %4 = vector.broadcast %3 : vector<4x1xf32> to vector<4x128xf32>
    %5 = arith.addf %2, %4 : vector<4x128xf32>
    %cst_5 = arith.constant 0.000000e+00 : f32
    %6 = vector.broadcast %cst_5 : f32 to vector<4x128xf32>
    %7 = arith.subf %6, %5 : vector<4x128xf32>
    %8 = math.exp %7 : vector<4x128xf32>
    %cst_6 = arith.constant 1.000000e+00 : f32
    %9 = vector.broadcast %cst_6 : f32 to vector<4x128xf32>
    %10 = arith.addf %9, %8 : vector<4x128xf32>
    %11 = tpu.reciprocal %10 {approx = true} : vector<4x128xf32> -> vector<4x128xf32>
    %12 = arith.mulf %5, %11 : vector<4x128xf32>
    %13 = arith.truncf %12 : vector<4x128xf32> to vector<4x128xbf16>
    %c0_7 = arith.constant 0 : index
    %c0_8 = arith.constant 0 : index
    %14 = vector.load %arg6[%c0_7, %c0_8] : memref<4x128xbf16, #tpu.memory_space<vmem>>, vector<4x128xbf16>
    tpu.vector_store %arg6[%c0_7, %c0_8], %13 {strides = array<i32>} : memref<4x128xbf16, #tpu.memory_space<vmem>>, vector<4x128xbf16>,
    %c0_9 = arith.constant 0 : index
    %c0_10 = arith.constant 0 : index
    %15 = vector.load %arg4[%c0_9, %c0_10] : memref<4x4xbf16, #tpu.memory_space<vmem>>, vector<4x4xbf16>
    %cst_11 = arith.constant dense<0.000000e+00> : vector<4x128xf32>
    %16 = tpu.matmul %15, %13, %cst_11 {dimension_numbers = #tpu.dot_dimension_numbers<[1], [0], [0], [1], [0, 0, 1, 1], [], []>} : vector<4x4xbf16>, vector<4x128xbf16>, vector<4x128xf32> -> vector<4x128xf32>
    %c0_12 = arith.constant 0 : index
    %c0_13 = arith.constant 0 : index
    %17 = vector.load %arg5[%c0_12, %c0_13] : memref<4x1xf32, #tpu.memory_space<vmem>>, vector<4x1xf32>
    %18 = vector.broadcast %17 : vector<4x1xf32> to vector<4x128xf32>
    %19 = arith.addf %16, %18 : vector<4x128xf32>
    %cst_14 = arith.constant 0.000000e+00 : f32
    %20 = vector.broadcast %cst_14 : f32 to vector<4x128xf32>
    %21 = arith.subf %20, %19 : vector<4x128xf32>
    %22 = math.exp %21 : vector<4x128xf32>
    %cst_15 = arith.constant 1.000000e+00 : f32
    %23 = vector.broadcast %cst_15 : f32 to vector<4x128xf32>
    %24 = arith.addf %23, %22 : vector<4x128xf32>
    %25 = tpu.reciprocal %24 {approx = true} : vector<4x128xf32> -> vector<4x128xf32>
    %26 = arith.mulf %19, %25 : vector<4x128xf32>
    %27 = arith.truncf %26 : vector<4x128xf32> to vector<4x128xbf16>
    %c0_16 = arith.constant 0 : index
    %c0_17 = arith.constant 0 : index
    %28 = vector.load %arg7[%c0_16, %c0_17] : memref<4x128xbf16, #tpu.memory_space<vmem>>, vector<4x128xbf16>
    tpu.vector_store %arg7[%c0_16, %c0_17], %27 {strides = array<i32>} : memref<4x128xbf16, #tpu.memory_space<vmem>>, vector<4x128xbf16>,
    return
  }
  func.func @transform_0(%arg0: i32) -> (i32, i32) {
    %c0_i32 = arith.constant 0 : i32
    %c0_i32_0 = arith.constant 0 : i32
    return %c0_i32, %arg0 : i32, i32
  }
  func.func @transform_1(%arg0: i32) -> (i32, i32) {
    %c0_i32 = arith.constant 0 : i32
    %c0_i32_0 = arith.constant 0 : i32
    %c0_i32_1 = arith.constant 0 : i32
    return %c0_i32, %c0_i32_0 : i32, i32
  }
  func.func @transform_2(%arg0: i32) -> (i32, i32) {
    %c0_i32 = arith.constant 0 : i32
    %c0_i32_0 = arith.constant 0 : i32
    %c0_i32_1 = arith.constant 0 : i32
    return %c0_i32, %c0_i32_0 : i32, i32
  }
  func.func @transform_3(%arg0: i32) -> (i32, i32) {
    %c0_i32 = arith.constant 0 : i32
    %c0_i32_0 = arith.constant 0 : i32
    %c0_i32_1 = arith.constant 0 : i32
    return %c0_i32, %c0_i32_0 : i32, i32
  }
  func.func @transform_4(%arg0: i32) -> (i32, i32) {
    %c0_i32 = arith.constant 0 : i32
    %c0_i32_0 = arith.constant 0 : i32
    %c0_i32_1 = arith.constant 0 : i32
    return %c0_i32, %c0_i32_0 : i32, i32
  }
  func.func @transform_5(%arg0: i32) -> (i32, i32) {
    %c0_i32 = arith.constant 0 : i32
    %c0_i32_0 = arith.constant 0 : i32
    return %c0_i32, %arg0 : i32, i32
  }
  func.func @transform_6(%arg0: i32) -> (i32, i32) {
    %c0_i32 = arith.constant 0 : i32
    %c0_i32_0 = arith.constant 0 : i32
    return %c0_i32, %arg0 : i32, i32
  }
}

module attributes {stable_mosaic.version = 11 : i64} {
  func.func @_stem_stage2_kernel(%arg0: i32, %arg1: memref<36x128xbf16, #tpu.memory_space<vmem>>, %arg2: memref<4x128xbf16, #tpu.memory_space<vmem>>, %arg3: memref<4x36xbf16, #tpu.memory_space<vmem>>, %arg4: memref<4x1xf32, #tpu.memory_space<vmem>>, %arg5: memref<8x4xbf16, #tpu.memory_space<vmem>>, %arg6: memref<8x4xbf16, #tpu.memory_space<vmem>>, %arg7: memref<8x1xf32, #tpu.memory_space<vmem>>, %arg8: memref<8x128xf32, #tpu.memory_space<vmem>>) attributes {dimension_semantics = [#tpu.dimension_semantics<parallel>], iteration_bounds = array<i64: 1>, scalar_prefetch = 0 : i64, scratch_operands = 0 : i64, tpu.core_type = #tpu.core_type<tc>, window_params = [{transform_indices = @transform_0, window_bounds = array<i64: 36, 128>}, {transform_indices = @transform_1, window_bounds = array<i64: 4, 128>}, {pipeline_mode = #tpu.pipeline_mode<synchronous>, transform_indices = @transform_2, window_bounds = array<i64: 4, 36>}, {pipeline_mode = #tpu.pipeline_mode<synchronous>, transform_indices = @transform_3, window_bounds = array<i64: 4, 1>}, {pipeline_mode = #tpu.pipeline_mode<synchronous>, transform_indices = @transform_4, window_bounds = array<i64: 8, 4>}, {pipeline_mode = #tpu.pipeline_mode<synchronous>, transform_indices = @transform_5, window_bounds = array<i64: 8, 4>}, {pipeline_mode = #tpu.pipeline_mode<synchronous>, transform_indices = @transform_6, window_bounds = array<i64: 8, 1>}, {transform_indices = @transform_7, window_bounds = array<i64: 8, 128>}]} {
    %c0 = arith.constant 0 : index
    %c0_0 = arith.constant 0 : index
    %0 = vector.load %arg3[%c0, %c0_0] : memref<4x36xbf16, #tpu.memory_space<vmem>>, vector<4x36xbf16>
    %c0_1 = arith.constant 0 : index
    %c0_2 = arith.constant 0 : index
    %1 = vector.load %arg1[%c0_1, %c0_2] : memref<36x128xbf16, #tpu.memory_space<vmem>>, vector<36x128xbf16>
    %cst = arith.constant dense<0.000000e+00> : vector<4x128xf32>
    %2 = tpu.matmul %0, %1, %cst {dimension_numbers = #tpu.dot_dimension_numbers<[1], [0], [0], [1], [0, 0, 1, 1], [], []>} : vector<4x36xbf16>, vector<36x128xbf16>, vector<4x128xf32> -> vector<4x128xf32>
    %c0_3 = arith.constant 0 : index
    %c0_4 = arith.constant 0 : index
    %3 = vector.load %arg4[%c0_3, %c0_4] : memref<4x1xf32, #tpu.memory_space<vmem>>, vector<4x1xf32>
    %4 = vector.broadcast %3 : vector<4x1xf32> to vector<4x128xf32>
    %5 = arith.addf %2, %4 : vector<4x128xf32>
    %cst_5 = arith.constant 0.000000e+00 : f32
    %6 = vector.broadcast %cst_5 : f32 to vector<4x128xf32>
    %7 = arith.subf %6, %5 : vector<4x128xf32>
    %8 = math.exp %7 : vector<4x128xf32>
    %cst_6 = arith.constant 1.000000e+00 : f32
    %9 = vector.broadcast %cst_6 : f32 to vector<4x128xf32>
    %10 = arith.addf %9, %8 : vector<4x128xf32>
    %11 = tpu.reciprocal %10 {approx = true} : vector<4x128xf32> -> vector<4x128xf32>
    %12 = arith.mulf %5, %11 : vector<4x128xf32>
    %c0_7 = arith.constant 0 : index
    %c0_8 = arith.constant 0 : index
    %13 = vector.load %arg5[%c0_7, %c0_8] : memref<8x4xbf16, #tpu.memory_space<vmem>>, vector<8x4xbf16>
    %14 = arith.truncf %12 : vector<4x128xf32> to vector<4x128xbf16>
    %cst_9 = arith.constant dense<0.000000e+00> : vector<8x128xf32>
    %15 = tpu.matmul %13, %14, %cst_9 {dimension_numbers = #tpu.dot_dimension_numbers<[1], [0], [0], [1], [0, 0, 1, 1], [], []>} : vector<8x4xbf16>, vector<4x128xbf16>, vector<8x128xf32> -> vector<8x128xf32>
    %c0_10 = arith.constant 0 : index
    %c0_11 = arith.constant 0 : index
    %16 = vector.load %arg6[%c0_10, %c0_11] : memref<8x4xbf16, #tpu.memory_space<vmem>>, vector<8x4xbf16>
    %c0_12 = arith.constant 0 : index
    %c0_13 = arith.constant 0 : index
    %17 = vector.load %arg2[%c0_12, %c0_13] : memref<4x128xbf16, #tpu.memory_space<vmem>>, vector<4x128xbf16>
    %cst_14 = arith.constant dense<0.000000e+00> : vector<8x128xf32>
    %18 = tpu.matmul %16, %17, %cst_14 {dimension_numbers = #tpu.dot_dimension_numbers<[1], [0], [0], [1], [0, 0, 1, 1], [], []>} : vector<8x4xbf16>, vector<4x128xbf16>, vector<8x128xf32> -> vector<8x128xf32>
    %19 = arith.addf %15, %18 : vector<8x128xf32>
    %c0_15 = arith.constant 0 : index
    %c0_16 = arith.constant 0 : index
    %20 = vector.load %arg7[%c0_15, %c0_16] : memref<8x1xf32, #tpu.memory_space<vmem>>, vector<8x1xf32>
    %21 = vector.broadcast %20 : vector<8x1xf32> to vector<8x128xf32>
    %22 = arith.addf %19, %21 : vector<8x128xf32>
    %cst_17 = arith.constant 0.000000e+00 : f32
    %23 = vector.broadcast %cst_17 : f32 to vector<8x128xf32>
    %24 = arith.subf %23, %22 : vector<8x128xf32>
    %25 = math.exp %24 : vector<8x128xf32>
    %cst_18 = arith.constant 1.000000e+00 : f32
    %26 = vector.broadcast %cst_18 : f32 to vector<8x128xf32>
    %27 = arith.addf %26, %25 : vector<8x128xf32>
    %28 = tpu.reciprocal %27 {approx = true} : vector<8x128xf32> -> vector<8x128xf32>
    %29 = arith.mulf %22, %28 : vector<8x128xf32>
    %c0_19 = arith.constant 0 : index
    %c0_20 = arith.constant 0 : index
    %30 = vector.load %arg8[%c0_19, %c0_20] : memref<8x128xf32, #tpu.memory_space<vmem>>, vector<8x128xf32>
    tpu.vector_store %arg8[%c0_19, %c0_20], %29 {strides = array<i32>} : memref<8x128xf32, #tpu.memory_space<vmem>>, vector<8x128xf32>,
    return
  }
  func.func @transform_0(%arg0: i32) -> (i32, i32) {
    %c0_i32 = arith.constant 0 : i32
    %c0_i32_0 = arith.constant 0 : i32
    return %c0_i32, %arg0 : i32, i32
  }
  func.func @transform_1(%arg0: i32) -> (i32, i32) {
    %c0_i32 = arith.constant 0 : i32
    %c0_i32_0 = arith.constant 0 : i32
    return %c0_i32, %arg0 : i32, i32
  }
  func.func @transform_2(%arg0: i32) -> (i32, i32) {
    %c0_i32 = arith.constant 0 : i32
    %c0_i32_0 = arith.constant 0 : i32
    %c0_i32_1 = arith.constant 0 : i32
    return %c0_i32, %c0_i32_0 : i32, i32
  }
  func.func @transform_3(%arg0: i32) -> (i32, i32) {
    %c0_i32 = arith.constant 0 : i32
    %c0_i32_0 = arith.constant 0 : i32
    %c0_i32_1 = arith.constant 0 : i32
    return %c0_i32, %c0_i32_0 : i32, i32
  }
  func.func @transform_4(%arg0: i32) -> (i32, i32) {
    %c0_i32 = arith.constant 0 : i32
    %c0_i32_0 = arith.constant 0 : i32
    %c0_i32_1 = arith.constant 0 : i32
    return %c0_i32, %c0_i32_0 : i32, i32
  }
  func.func @transform_5(%arg0: i32) -> (i32, i32) {
    %c0_i32 = arith.constant 0 : i32
    %c0_i32_0 = arith.constant 0 : i32
    %c0_i32_1 = arith.constant 0 : i32
    return %c0_i32, %c0_i32_0 : i32, i32
  }
  func.func @transform_6(%arg0: i32) -> (i32, i32) {
    %c0_i32 = arith.constant 0 : i32
    %c0_i32_0 = arith.constant 0 : i32
    %c0_i32_1 = arith.constant 0 : i32
    return %c0_i32, %c0_i32_0 : i32, i32
  }
  func.func @transform_7(%arg0: i32) -> (i32, i32) {
    %c0_i32 = arith.constant 0 : i32
    %c0_i32_0 = arith.constant 0 : i32
    return %c0_i32, %arg0 : i32, i32
  }
}

</mosaic_0001>

<bundles_post_ra>
// kernel: stem_forward.2
= control target key start
LH: loop header
LB: loop body
LE: loop exit
PB: predicated region body
PF: predicated region fallthrough
CT: control target
= control target key end

     0   :  { %v218_v0 = vmov 0.0   ;;  %vm219_vm0 = vmmov 0   ;;  %v220_v2 = vmov 0   ;;  %vm54_vm1 = vcmask 1041408   ;;  %s285_s0 = inlined_call_operand.vmem [shape: bf16[36,128], index: 0, kind: input, shape index: {}]   ;;  %s286_s2 = inlined_call_operand.vmem [shape: f32[4,1], index: 2, kind: input, shape index: {}]   ;;  %s287_s4 = inlined_call_operand.vmem [shape: f32[4,1], index: 4, kind: input, shape index: {}]   ;;  %s288_s1 = inlined_call_operand.vmem [shape: bf16[4,36], index: 1, kind: input, shape index: {}]   ;;  %s289_s5 = inlined_call_operand.vmem [shape: bf16[4,128], index: 5, kind: output, shape index: {0}]   ;;  %s290_s3 = inlined_call_operand.vmem [shape: bf16[4,4], index: 3, kind: input, shape index: {}]   ;;  %s291_s6 = inlined_call_operand.vmem [shape: bf16[4,128], index: 6, kind: output, shape index: {1}]  }
   0x1   :  { %187 = vmatprep.subr.bf16.mxu0 %v218_v0  ;;  %v207_v1 = vld [vmem:[%s285_s0] sm:$0xff]   ;;  %193 = vmatprep.mubr.msk.bf16.mxu0 %vm219_vm0, %v218_v0  ;;  %v208_v3 = vld [vmem:[%s285_s0 + $0x8] sm:$0xff]   ;;  %v209_v4 = vld [vmem:[%s285_s0 + $0x10] ss:$0 sps:$4 sm:$0x33]   ;;  %vm50_vm2 = vcmask 293888  }
   0x2   :  { %206 = vset.pattern.permute.xlu0 %v220_v2  ;;  %197 = vmatprep.subr.bf16.mxu1 %v218_v0  ;;  %v29_v5 = vld [vmem:[%s286_s2] sm:$0xf]  ;;  %v56_v7 = vsel %vm54_vm1, %v209_v4, 0  ;;  %vm113_vm3 = vcmask 31744  }
   0x3   :  { %188 = vmatpush3.bf16.msra.mxu0 %v207_v1  ;;  %199 = vmatprep.mubr.msk.bf16.mxu1 %vm219_vm0, %v218_v0  ;;  %v107_v6 = vld [vmem:[%s287_s4] sm:$0xf] }
   0x4   :  { %189 = vmatprep.subr.bf16.mxu0 %v218_v0  ;;  %32 = vperm.xlu0 %206, %v29_v5   ;;  %v23_v8 = vld [vmem:[%s288_s1] sm:$0x3] }
   0x5   :  { %v106_v23 = vld [vmem:[%s290_s3] sm:$0x3] }
   0x7   :  { %190 = vmatpush3.bf16.msra.mxu0 %v208_v3 }
   0x8   :  { %191 = vmatprep.subr.bf16.mxu0 %v218_v0  ;;  %110 = vperm.xlu0 %206, %v107_v6  }
   0xb   :  { %192 = vmatpush3.bf16.msra.mxu0 %v56_v7 }
   0xe   :  { %194 = vmatmul.mubr.msk.bf16.vlgmr.msra.gmra.mrb[0].mxu0 %vm50_vm2, %v23_v8 }
  0x83   :  { %v33_v9 = vpop.permute.xlu0 %32 }
  0x87   :  { %v111_v24 = vpop.permute.xlu0 %110 }
  0xe1   :  { %v92_v10 = vpop.f32.mrb[0].mxu0 }
  0xe2   :  { %v93_v11 = vadd.f32 %v92_v10, %v33_v9  ;;  %v195_v12 = vpop.f32.mrb[1].mxu0 }
  0xe3   :  { %v95_v13 = vpop.f32.mrb[2].mxu0 }
  0xe4   :  { %v98_v14 = vsub.f32 0.0, %v93_v11  ;;  %v196_v15 = vpop.f32.mrb[3].mxu0 }
  0xe6   :  { %v99_v16 = vmul.f32 1.442695, %v98_v14 }
  0xe8   :  { %210 = vpow2.f32 %v99_v16 }
  0xf2   :  { %v211_v17 = vpop.eup %210 }
  0xf3   :  { %v101_v18 = vadd.f32 1.0, %v211_v17 }
  0xf5   :  { %212 = vrcp.f32 %v101_v18 }
  0xff   :  { %v213_v19 = vpop.eup %212 }
 0x100   :  { %v103_v20 = vmul.f32 %v213_v19, %v93_v11 }
 0x102   :  { %v104_v21 = vpack.c.bf16 %v103_v20, %v103_v20 }
 0x104   :  { %105 = vst [vmem:[%s289_s5] sm:$0x3] %v104_v21  ;;  %v118_v22 = vsel %vm54_vm1, %v104_v21, 0 }
 0x105   :  { %198 = vmatpush3.bf16.msra.mxu1 %v118_v22 }
 0x108   :  { %200 = vmatmul.mubr.msk.bf16.vlgmr.msra.gmra.mrb[0].mxu1 %vm113_vm3, %v106_v23 }
 0x1db   :  { %v154_v25 = vpop.f32.mrb[0].mxu1 }
 0x1dc   :  { %v155_v26 = vadd.f32 %v154_v25, %v111_v24  ;;  %v201_v27 = vpop.f32.mrb[1].mxu1 }
 0x1dd   :  { %v157_v28 = vpop.f32.mrb[2].mxu1 }
 0x1de   :  { %v160_v29 = vsub.f32 0.0, %v155_v26  ;;  %v202_v30 = vpop.f32.mrb[3].mxu1 }
 0x1e0   :  { %v161_v31 = vmul.f32 1.442695, %v160_v29 }
 0x1e2   :  { %214 = vpow2.f32 %v161_v31 }
 0x1ec   :  { %v215_v32 = vpop.eup %214 }
 0x1ed   :  { %v163_v33 = vadd.f32 1.0, %v215_v32 }
 0x1ef   :  { %216 = vrcp.f32 %v163_v33 }
 0x1f9   :  { %v217_v34 = vpop.eup %216 }
 0x1fa   :  { %v165_v35 = vmul.f32 %v217_v34, %v155_v26 }
 0x1fc   :  { %v166_v36 = vpack.c.bf16 %v165_v35, %v165_v35 }
 0x1fe   :  { %167 = vst [vmem:[%s291_s6] sm:$0x3] %v166_v36 }

// kernel: stem_forward.3
= control target key start
LH: loop header
LB: loop body
LE: loop exit
PB: predicated region body
PF: predicated region fallthrough
CT: control target
= control target key end

     0   :  { %v274_v0 = vmov 0.0   ;;  %vm275_vm0 = vmmov 0   ;;  %v276_v2 = vmov 0   ;;  %vm58_vm1 = vcmask 1041408   ;;  %s355_s0 = inlined_call_operand.vmem [shape: bf16[36,128], index: 0, kind: input, shape index: {}]   ;;  %s356_s3 = inlined_call_operand.vmem [shape: f32[4,1], index: 3, kind: input, shape index: {}]   ;;  %s357_s6 = inlined_call_operand.vmem [shape: f32[8,1], index: 6, kind: input, shape index: {}]   ;;  %s358_s2 = inlined_call_operand.vmem [shape: bf16[4,36], index: 2, kind: input, shape index: {}]   ;;  %s359_s1 = inlined_call_operand.vmem [shape: bf16[4,128], index: 1, kind: input, shape index: {}]   ;;  %s360_s5 = inlined_call_operand.vmem [shape: bf16[8,4], index: 5, kind: input, shape index: {}]   ;;  %s361_s4 = inlined_call_operand.vmem [shape: bf16[8,4], index: 4, kind: input, shape index: {}]   ;;  %s362_s7 = inlined_call_operand.vmem [shape: f32[8,128], index: 7, kind: output, shape index: {}]  }
   0x1   :  { %237 = vmatprep.subr.bf16.mxu0 %v274_v0  ;;  %v263_v1 = vld [vmem:[%s355_s0] sm:$0xff]   ;;  %243 = vmatprep.mubr.msk.bf16.mxu0 %vm275_vm0, %v274_v0  ;;  %v264_v3 = vld [vmem:[%s355_s0 + $0x8] sm:$0xff]   ;;  %v265_v4 = vld [vmem:[%s355_s0 + $0x10] ss:$0 sps:$4 sm:$0x33]   ;;  %vm54_vm2 = vcmask 293888  }
   0x2   :  { %262 = vset.pattern.permute.xlu0 %v276_v2  ;;  %247 = vmatprep.subr.bf16.mxu1 %v274_v0  ;;  %v33_v5 = vld [vmem:[%s356_s3] sm:$0xf]  ;;  %v60_v7 = vsel %vm58_vm1, %v265_v4, 0  ;;  %vm112_vm3 = vcmask 31744  }
   0x3   :  { %238 = vmatpush3.bf16.msra.mxu0 %v263_v1  ;;  %249 = vmatprep.mubr.msk.bf16.mxu1 %vm275_vm0, %v274_v0  ;;  %v205_v6 = vld [vmem:[%s357_s6] sm:$0xff] }
   0x4   :  { %239 = vmatprep.subr.bf16.mxu0 %v274_v0  ;;  %36 = vperm.xlu0 %262, %v33_v5   ;;  %v27_v8 = vld [vmem:[%s358_s2] sm:$0x3] }
   0x5   :  { %v111_v9 = vld [vmem:[%s359_s1] sm:$0x3] }
   0x6   :  { %v117_v10 = vsel %vm58_vm1, %v111_v9, 0  ;;  %v110_v11 = vld [vmem:[%s360_s5] sm:$0xf] }
   0x7   :  { %240 = vmatpush3.bf16.msra.mxu0 %v264_v3  ;;  %248 = vmatpush3.bf16.msra.mxu1 %v117_v10  ;;  %v108_v26 = vld [vmem:[%s361_s4] sm:$0xf] }
   0x8   :  { %241 = vmatprep.subr.bf16.mxu0 %v274_v0  ;;  %208 = vperm.xlu0 %262, %v205_v6  }
   0x9   :  { %253 = vmatprep.subr.bf16.mxu1 %v274_v0 }
   0xa   :  { %250 = vmatmul.mubr.msk.bf16.vlgmr.msra.gmra.mrb[0].mxu1 %vm112_vm3, %v110_v11 }
   0xb   :  { %242 = vmatpush3.bf16.msra.mxu0 %v60_v7  ;;  %255 = vmatprep.mubr.msk.bf16.mxu1 %vm275_vm0, %v274_v0 }
   0xe   :  { %244 = vmatmul.mubr.msk.bf16.vlgmr.msra.gmra.mrb[0].mxu0 %vm54_vm2, %v27_v8 }
  0x83   :  { %v37_v12 = vpop.permute.xlu0 %36 }
  0x87   :  { %v209_v34 = vpop.permute.xlu0 %208 }
  0xdd   :  { %v153_v27 = vpop.f32.mrb[0].mxu1 }
  0xde   :  { %v251_v28 = vpop.f32.mrb[1].mxu1 }
  0xdf   :  { %v156_v29 = vpop.f32.mrb[2].mxu1 }
  0xe0   :  { %v252_v30 = vpop.f32.mrb[3].mxu1 }
  0xe1   :  { %v96_v13 = vpop.f32.mrb[0].mxu0 }
  0xe2   :  { %v97_v14 = vadd.f32 %v96_v13, %v37_v12  ;;  %v245_v15 = vpop.f32.mrb[1].mxu0 }
  0xe3   :  { %v99_v16 = vpop.f32.mrb[2].mxu0 }
  0xe4   :  { %v102_v17 = vsub.f32 0.0, %v97_v14  ;;  %v246_v18 = vpop.f32.mrb[3].mxu0 }
  0xe6   :  { %v103_v19 = vmul.f32 1.442695, %v102_v17 }
  0xe8   :  { %266 = vpow2.f32 %v103_v19 }
  0xf2   :  { %v267_v20 = vpop.eup %266 }
  0xf3   :  { %v105_v21 = vadd.f32 1.0, %v267_v20 }
  0xf5   :  { %268 = vrcp.f32 %v105_v21 }
  0xff   :  { %v269_v22 = vpop.eup %268 }
 0x100   :  { %v107_v23 = vmul.f32 %v269_v22, %v97_v14 }
 0x102   :  { %v109_v24 = vpack.c.bf16 %v107_v23, %v107_v23 }
 0x104   :  { %v163_v25 = vsel %vm58_vm1, %v109_v24, 0 }
 0x105   :  { %254 = vmatpush3.bf16.msra.mxu1 %v163_v25 }
 0x108   :  { %256 = vmatmul.mubr.msk.bf16.vlgmr.msra.gmra.mrb[4].mxu1 %vm112_vm3, %v108_v26 }
 0x1db   :  { %v199_v31 = vpop.f32.mrb[4].mxu1 }
 0x1dc   :  { %v200_v32 = vadd.f32 %v199_v31, %v153_v27  ;;  %v257_v33 = vpop.f32.mrb[5].mxu1 }
 0x1dd   :  { %v202_v35 = vpop.f32.mrb[6].mxu1 }
 0x1de   :  { %v211_v36 = vadd.f32 %v209_v34, %v200_v32  ;;  %v258_v37 = vpop.f32.mrb[7].mxu1 }
 0x1e0   :  { %v212_v38 = vsub.f32 0.0, %v211_v36 }
 0x1e2   :  { %v213_v39 = vmul.f32 1.442695, %v212_v38 }
 0x1e4   :  { %270 = vpow2.f32 %v213_v39 }
 0x1ee   :  { %v271_v40 = vpop.eup %270 }
 0x1ef   :  { %v215_v41 = vadd.f32 1.0, %v271_v40 }
 0x1f1   :  { %272 = vrcp.f32 %v215_v41 }
 0x1fb   :  { %v273_v42 = vpop.eup %272 }
 0x1fc   :  { %v217_v43 = vmul.f32 %v273_v42, %v211_v36 }
 0x1fe   :  { %218 = vst [vmem:[%s362_s7] sm:$0xff] %v217_v43 }

</bundles_post_ra>
